<compile_context>
chip_gen: v5e
topology: v5e:2x2
jax: 0.10.0
libtpu: 0.0.40
codegen_flags: <defaults>
</compile_context>

<pallas_src>
import numpy as np
import jax
import jax.numpy as jnp
from jax.experimental import pallas as pl
from jax.experimental.pallas import tpu as pltpu


def _choose_tiles(n):
    # TI <= 512, TJ = 256 keeps the (TJ, TI) f32 K block (~512 KiB) plus
    # double-buffered input tiles well inside v7x's 32 MiB scoped VMEM, while
    # amortizing the ~0.35 us/step pipeline overhead on v6e/v5e too.
    if n >= 512:
        return 512, 256
    return 128, 128


def _mmd_bilinear_kernel(ls_row_ref, ls_col_ref, wa_ref, wb_ref, out_ref, tmp_ref):
    """Accumulate out[p] = sum_{i,j} wa[p,i] * exp(-(ls_i - ls_j)^2) * wb[p,j].

    Grid = (i blocks, j blocks); j is the reduction axis accumulating
    tmp[p, i_local] = sum_j wb[p, j] * K[i, j] in VMEM scratch; the wa
    lane-reduction and output store happen only at the last j step.
    """
    j = pl.program_id(1)

    @pl.when(j == 0)
    def _():
        tmp_ref[...] = jnp.zeros_like(tmp_ref)

    ls_i = ls_row_ref[0, :]                       # (TI,)  row tile of logsigmoid
    ls_j = ls_col_ref[0, :]                       # (TJ,)  column tile of logsigmoid
    diff = ls_j[:, None] - ls_i[None, :]          # (TJ, TI)
    k = jnp.exp(-(diff * diff))                   # RBF kernel block K[j, i] (EUP-bound)
    # tmp[p, i] += sum_j wb[p, j] * K[i, j]   (K is symmetric)
    tmp_ref[...] += jnp.dot(wb_ref[...], k, preferred_element_type=jnp.float32)

    @pl.when(j == pl.num_programs(1) - 1)
    def _():
        partial = jnp.sum(wa_ref[...] * tmp_ref[...], axis=1, keepdims=True)  # (PP, 1)
        # Lane-dense (128-wide) store; wrapper reads lane 0.
        out_ref[...] = jnp.broadcast_to(partial[None], out_ref.shape)


def _mmd_bilinear(ls_pad, wa, wb, ti, tj):
    """ls_pad: (1, NP) f32; wa, wb: (PP, NP) f32 -> (PP,) bilinear sums."""
    _, NP = ls_pad.shape
    PP = wa.shape[0]
    ni, nj = NP // ti, NP // tj
    out = pl.pallas_call(
        _mmd_bilinear_kernel,
        out_shape=jax.ShapeDtypeStruct((ni, PP, 128), jnp.float32),
        grid_spec=pltpu.PrefetchScalarGridSpec(
            num_scalar_prefetch=0,
            grid=(ni, nj),
            in_specs=[
                pl.BlockSpec((1, ti), lambda i, j: (0, i)),    # logsigmoid row tile
                pl.BlockSpec((1, tj), lambda i, j: (0, j)),    # logsigmoid column tile
                pl.BlockSpec((PP, ti), lambda i, j: (0, i)),   # wa row tile
                pl.BlockSpec((PP, tj), lambda i, j: (0, j)),   # wb column tile
            ],
            out_specs=pl.BlockSpec((1, PP, 128), lambda i, j: (i, 0, 0)),
            scratch_shapes=[pltpu.VMEM((PP, ti), jnp.float32)],
        ),
        compiler_params=pltpu.CompilerParams(
            dimension_semantics=("parallel", "arbitrary")),
    )(ls_pad, ls_pad, wa, wb)
    # Sum per-i-block partials (lane 0 holds the value) in XLA.
    return jnp.sum(out[:, :, 0], axis=0)


def mmd_loss(outputs, labels, group, fair_criteria="EqOdd"):
    """Forward pass of MMDLoss. Returns a shape-(1,) float32 array (like FloatTensor([..]))."""
    assert fair_criteria in ("EqOdd", "EqOpp")
    outputs = jnp.asarray(outputs, jnp.float32).reshape(-1)
    # TODO(synk): group.unique()/skip-print control flow is data dependent, so the
    # mask construction stays on the host (matches eager PyTorch); it blocks jit/grad.
    labels_np = np.asarray(jax.device_get(labels)).reshape(-1)
    group_np = np.asarray(jax.device_get(group)).reshape(-1)

    n = int(outputs.shape[0])
    ti, tj = _choose_tiles(n)
    NP = ((n + ti - 1) // ti) * ti  # ti is a multiple of tj, so NP tiles both axes

    # logsigmoid once, on device (hoisted out of the kernel).
    ls = jnp.minimum(outputs, 0.0) - jnp.log1p(jnp.exp(-jnp.abs(outputs)))
    ls_pad = jnp.zeros((1, NP), jnp.float32).at[0, :n].set(ls)

    unique_labels = [0, 1] if fair_criteria == "EqOdd" else [0]

    # Build batched (wa, wb) mask pairs + scalar combine coefficients.
    wa_rows, wb_rows, combine = [], [], []
    for the_label in unique_labels:
        lmask = labels_np == the_label
        if lmask.sum() == 0:
            print("Skipping regularization due to no samples")
            continue
        sub_groups = np.unique(group_np[lmask])
        n_groups = len(sub_groups)
        if n_groups == 1:
            continue  # compute_mmd_group returns 0 when only one group
        f = lmask.astype(np.float32)
        nf = float(f.sum())
        # Deduplicated mean(K_yy): identical for every group of this label;
        # emit once with the G * (1/G) coefficient folded in.
        wa_rows.append(np.pad(f, (0, NP - n)))
        wb_rows.append(np.pad(f, (0, NP - n)))
        combine.append(1.0 / (nf * nf))
        for g in sub_groups:
            s = (lmask & (group_np == g)).astype(np.float32)
            ns = float(s.sum())
            scale = 1.0 / n_groups
            # mean(K_xx)
            wa_rows.append(np.pad(s, (0, NP - n)))
            wb_rows.append(np.pad(s, (0, NP - n)))
            combine.append(scale / (ns * ns))
            # -2 * mean(K_xy)
            wa_rows.append(np.pad(s, (0, NP - n)))
            wb_rows.append(np.pad(f, (0, NP - n)))
            combine.append(-2.0 * scale / (ns * nf))

    if not wa_rows:
        return jnp.zeros((1,), jnp.float32)

    P = len(wa_rows)
    PP = ((P + 7) // 8) * 8
    WA = np.zeros((PP, NP), np.float32)
    WB = np.zeros((PP, NP), np.float32)
    WA[:P] = np.stack(wa_rows)
    WB[:P] = np.stack(wb_rows)

    sums = _mmd_bilinear(ls_pad, jnp.asarray(WA), jnp.asarray(WB), ti, tj)  # (PP,)
    coefs = jnp.asarray(np.asarray(combine, np.float32))
    mmd = jnp.sum(coefs * sums[:P])
    return mmd.reshape(1)


# ---------- pure-numpy reference mirroring the PyTorch code ----------
def _ref_compute_kernel(x, y):
    d = x.shape[1]
    ki = ((x[:, None, :] - y[None, :, :]) ** 2).mean(axis=2) / float(d)
    return np.exp(-ki)


def _ref_compute_mmd(x, y):
    return (_ref_compute_kernel(x, x).mean()
            + _ref_compute_kernel(y, y).mean()
            - 2.0 * _ref_compute_kernel(x, y).mean())


def _ref_mmd_loss(outputs, labels, group, fair_criteria):
    o = np.asarray(outputs, np.float64)
    ls = (np.minimum(o, 0.0) - np.log1p(np.exp(-np.abs(o))))[:, None]
    labels = np.asarray(labels)
    group = np.asarray(group)
    mmd = 0.0
    unique_labels = [0, 1] if fair_criteria == "EqOdd" else [0]
    for L in unique_labels:
        m = labels == L
        if m.sum() == 0:
            continue
        x = ls[m]
        g = group[m]
        ug = np.unique(g)
        if len(ug) == 1:
            continue
        acc = 0.0
        for gg in ug:
            acc += _ref_compute_mmd(x[g == gg], x)
        mmd += acc / len(ug)
    return np.float32(mmd)


if __name__ == "__main__":
    key = jax.random.PRNGKey(0)
    k1, k2, k3 = jax.random.split(key, 3)
    N = 200  # exercises multi-tile (2x2 grid at 128-tiles) + padding cancellation
    outputs = jax.random.normal(k1, (N,), jnp.float32)          # logits, shape (N,)
    labels = jax.random.bernoulli(k2, 0.5, (N,)).astype(jnp.int32)
    group = jax.random.randint(k3, (N,), 0, 2, dtype=jnp.int32)

    result = mmd_loss(outputs, labels, group, fair_criteria="EqOdd")
    result = jax.block_until_ready(result)

    ref = _ref_mmd_loss(np.asarray(outputs), np.asarray(labels),
                        np.asarray(group), "EqOdd")
    np.testing.assert_allclose(np.asarray(result)[0], ref, rtol=1e-3, atol=1e-5)

    print("KERNEL_OK")
</pallas_src>

<mosaic_0001>
module attributes {stable_mosaic.version = 11 : i64} {
  func.func @_mmd_bilinear_kernel(%arg0: i32, %arg1: i32, %arg2: memref<1x128xf32, #tpu.memory_space<vmem>>, %arg3: memref<1x128xf32, #tpu.memory_space<vmem>>, %arg4: memref<16x128xf32, #tpu.memory_space<vmem>>, %arg5: memref<16x128xf32, #tpu.memory_space<vmem>>, %arg6: memref<1x16x128xf32, #tpu.memory_space<vmem>>, %arg7: memref<16x128xf32, #tpu.memory_space<vmem>>) attributes {dimension_semantics = [#tpu.dimension_semantics<parallel>, #tpu.dimension_semantics<arbitrary>], iteration_bounds = array<i64: 2, 2>, scalar_prefetch = 0 : i64, scratch_operands = 1 : i64, tpu.core_type = #tpu.core_type<tc>, window_params = [{transform_indices = @transform_0, window_bounds = array<i64: 1, 128>}, {transform_indices = @transform_1, window_bounds = array<i64: 1, 128>}, {transform_indices = @transform_2, window_bounds = array<i64: 16, 128>}, {transform_indices = @transform_3, window_bounds = array<i64: 16, 128>}, {transform_indices = @transform_4, window_bounds = array<i64: 1, 16, 128>}]} {
    %c0_i32 = arith.constant 0 : i32
    %0 = arith.cmpi eq, %arg1, %c0_i32 : i32
    %1 = arith.extui %0 : i1 to i32
    %c0_i32_0 = arith.constant 0 : i32
    %2 = arith.cmpi ne, %1, %c0_i32_0 : i32
    scf.if %2 {
      %cst_12 = arith.constant 0.000000e+00 : f32
      %24 = vector.broadcast %cst_12 : f32 to vector<16x128xf32>
      %c0_13 = arith.constant 0 : index
      %c0_14 = arith.constant 0 : index
      %25 = vector.load %arg7[%c0_13, %c0_14] : memref<16x128xf32, #tpu.memory_space<vmem>>, vector<16x128xf32>
      tpu.vector_store %arg7[%c0_13, %c0_14], %24 {strides = array<i32>} : memref<16x128xf32, #tpu.memory_space<vmem>>, vector<16x128xf32>,
    } else {
    }
    %c0 = arith.constant 0 : index
    %c0_1 = arith.constant 0 : index
    %3 = vector.load %arg2[%c0, %c0_1] : memref<1x128xf32, #tpu.memory_space<vmem>>, vector<1x128xf32>
    %4 = vector.shape_cast %3 : vector<1x128xf32> to vector<128xf32>
    %c0_2 = arith.constant 0 : index
    %c0_3 = arith.constant 0 : index
    %5 = vector.load %arg3[%c0_2, %c0_3] : memref<1x128xf32, #tpu.memory_space<vmem>>, vector<1x128xf32>
    %6 = vector.shape_cast %5 : vector<1x128xf32> to vector<128xf32>
    %7 = vector.shape_cast %6 : vector<128xf32> to vector<128x1xf32>
    %8 = vector.shape_cast %4 : vector<128xf32> to vector<1x128xf32>
    %9 = vector.broadcast %7 : vector<128x1xf32> to vector<128x128xf32>
    %10 = vector.broadcast %8 : vector<1x128xf32> to vector<128x128xf32>
    %11 = arith.subf %9, %10 : vector<128x128xf32>
    %12 = arith.mulf %11, %11 : vector<128x128xf32>
    %cst = arith.constant 0.000000e+00 : f32
    %13 = vector.broadcast %cst : f32 to vector<128x128xf32>
    %14 = arith.subf %13, %12 : vector<128x128xf32>
    %15 = math.exp %14 : vector<128x128xf32>
    %c0_4 = arith.constant 0 : index
    %c0_5 = arith.constant 0 : index
    %16 = vector.load %arg7[%c0_4, %c0_5] : memref<16x128xf32, #tpu.memory_space<vmem>>, vector<16x128xf32>
    %c0_6 = arith.constant 0 : index
    %c0_7 = arith.constant 0 : index
    %17 = vector.load %arg5[%c0_6, %c0_7] : memref<16x128xf32, #tpu.memory_space<vmem>>, vector<16x128xf32>
    %cst_8 = arith.constant dense<0.000000e+00> : vector<16x128xf32>
    %18 = tpu.matmul %17, %15, %cst_8 {dimension_numbers = #tpu.dot_dimension_numbers<[1], [0], [0], [1], [0, 0, 1, 1], [], []>} : vector<16x128xf32>, vector<128x128xf32>, vector<16x128xf32> -> vector<16x128xf32>
    %19 = arith.addf %16, %18 : vector<16x128xf32>
    %c0_9 = arith.constant 0 : index
    %c0_10 = arith.constant 0 : index
    %20 = vector.load %arg7[%c0_9, %c0_10] : memref<16x128xf32, #tpu.memory_space<vmem>>, vector<16x128xf32>
    tpu.vector_store %arg7[%c0_9, %c0_10], %19 {strides = array<i32>} : memref<16x128xf32, #tpu.memory_space<vmem>>, vector<16x128xf32>,
    %c1_i32 = arith.constant 1 : i32
    %21 = arith.cmpi eq, %arg1, %c1_i32 : i32
    %22 = arith.extui %21 : i1 to i32
    %c0_i32_11 = arith.constant 0 : i32
    %23 = arith.cmpi ne, %22, %c0_i32_11 : i32
    scf.if %23 {
      %c0_12 = arith.constant 0 : index
      %c0_13 = arith.constant 0 : index
      %24 = vector.load %arg4[%c0_12, %c0_13] : memref<16x128xf32, #tpu.memory_space<vmem>>, vector<16x128xf32>
      %c0_14 = arith.constant 0 : index
      %c0_15 = arith.constant 0 : index
      %25 = vector.load %arg7[%c0_14, %c0_15] : memref<16x128xf32, #tpu.memory_space<vmem>>, vector<16x128xf32>
      %26 = arith.mulf %24, %25 : vector<16x128xf32>
      %cst_16 = arith.constant dense<0.000000e+00> : vector<16xf32>
      %27 = vector.multi_reduction <add>, %26, %cst_16 [1] : vector<16x128xf32> to vector<16xf32>
      %28 = vector.shape_cast %27 : vector<16xf32> to vector<16x1xf32>
      %29 = vector.shape_cast %28 : vector<16x1xf32> to vector<1x16x1xf32>
      %30 = vector.shape_cast %29 : vector<1x16x1xf32> to vector<1x16x1xf32>
      %31 = vector.broadcast %30 : vector<1x16x1xf32> to vector<1x16x128xf32>
      %c0_17 = arith.constant 0 : index
      %c0_18 = arith.constant 0 : index
      %c0_19 = arith.constant 0 : index
      %32 = vector.load %arg6[%c0_17, %c0_18, %c0_19] : memref<1x16x128xf32, #tpu.memory_space<vmem>>, vector<1x16x128xf32>
      tpu.vector_store %arg6[%c0_17, %c0_18, %c0_19], %31 {strides = array<i32>} : memref<1x16x128xf32, #tpu.memory_space<vmem>>, vector<1x16x128xf32>,
    } else {
    }
    return
  }
  func.func @transform_0(%arg0: i32, %arg1: i32) -> (i32, i32) {
    %c0_i32 = arith.constant 0 : i32
    %c0_i32_0 = arith.constant 0 : i32
    return %c0_i32, %arg0 : i32, i32
  }
  func.func @transform_1(%arg0: i32, %arg1: i32) -> (i32, i32) {
    %c0_i32 = arith.constant 0 : i32
    %c0_i32_0 = arith.constant 0 : i32
    return %c0_i32, %arg1 : i32, i32
  }
  func.func @transform_2(%arg0: i32, %arg1: i32) -> (i32, i32) {
    %c0_i32 = arith.constant 0 : i32
    %c0_i32_0 = arith.constant 0 : i32
    return %c0_i32, %arg0 : i32, i32
  }
  func.func @transform_3(%arg0: i32, %arg1: i32) -> (i32, i32) {
    %c0_i32 = arith.constant 0 : i32
    %c0_i32_0 = arith.constant 0 : i32
    return %c0_i32, %arg1 : i32, i32
  }
  func.func @transform_4(%arg0: i32, %arg1: i32) -> (i32, i32, i32) {
    %c0_i32 = arith.constant 0 : i32
    %c0_i32_0 = arith.constant 0 : i32
    %c0_i32_1 = arith.constant 0 : i32
    return %arg0, %c0_i32, %c0_i32_0 : i32, i32, i32
  }
}

</mosaic_0001>

<bundles_post_ra>
// kernel: tpu_custom_call.1
= control target key start
LH: loop header
LB: loop body
LE: loop exit
PB: predicated region body
PF: predicated region fallthrough
CT: control target
= control target key end

     0   :  { %s1529_s0 = inlined_call_operand.hbm [shape: f32[1,256], index: 0, kind: input, shape index: {}]   ;;  %s1530_s1 = inlined_call_operand.hbm [shape: f32[1,256], index: 1, kind: input, shape index: {}]   ;;  %s1531_s2 = inlined_call_operand.hbm [shape: f32[16,256], index: 2, kind: input, shape index: {}]   ;;  %s1532_s3 = inlined_call_operand.hbm [shape: f32[16,256], index: 3, kind: input, shape index: {}]   ;;  %s1533_s4 = inlined_call_operand.hbm [shape: f32[2,16,128], index: 4, kind: output, shape index: {}]  }
   0x1   :  { %1549 = sst [smem:[#allocation31_spill]] %s1529_s0 }
   0x2   :  { %1550 = sst [smem:[#allocation32_spill]] %s1530_s1 }
   0x3   :  { %1551 = sst [smem:[#allocation33_spill]] %s1533_s4 }
   0x4   :  { %9 = vsyncpa [#allocation4], 0 }
   0x5   :  { %11 = vsyncpa [#allocation4 + $0x1], 0 }
   0x6   :  { %12 = vsyncpa [#allocation7], 0 }
   0x7   :  { %14 = vsyncpa [#allocation7 + $0x1], 0 }
   0x8   :  { %15 = vsyncpa [#allocation10], 0 }
   0x9   :  { %17 = vsyncpa [#allocation10 + $0x1], 0 }
   0xa   :  { %18 = vsyncpa [#allocation5], 0 }
   0xb   :  { %20 = vsyncpa [#allocation5 + $0x1], 0  ;;  %s1227_s15 = smov 0   ;;  %s1229_s16 = smov 0  }
   0xc   :  { %s1231_s17 = smov 0   ;;  %s1233_s18 = smov 0  }
   0xd   :  { %s1235_s19 = smov 0   ;;  %s1237_s20 = smov 0  }
   0xe   :  { %s1239_s21 = smov 0   ;;  %s1241_s22 = smov 0  }
   0xf   :  { %s1243_s23 = smov 0   ;;  %s1245_s24 = smov 0  }
  0x10   :  { %s1247_s25 = smov 0  }
  0x11 LB: > { %1552 = sst [smem:[#allocation17_spill]] %s1162_s17  ;;  %s1281_s26 = sadd.s32 4294967295, %s1194_s25   ;;  %s1194_s25 = sphi %s1247_s25, %s26_s25   ;;  %s1190_s24 = sphi %s1245_s24, %s1595_s24   ;;  %s1186_s23 = sphi %s1243_s23, %s1601_s23   ;;  %s1182_s22 = sphi %s1241_s22, %s1593_s22   ;;  %s1178_s21 = sphi %s1239_s21, %s1600_s21   ;;  %s1174_s20 = sphi %s1237_s20, %s1592_s20   ;;  %s1170_s19 = sphi %s1235_s19, %s1599_s19   ;;  %s1166_s18 = sphi %s1233_s18, %s1598_s18   ;;  %s1162_s17 = sphi %s1231_s17, %s1590_s17   ;;  %s1158_s16 = sphi %s1229_s16, %s1597_s16   ;;  %s1154_s15 = sphi %s1227_s15, %s1596_s15  }
  0x12   : > { %1553 = sst [smem:[#allocation18_spill]] %s1166_s18  ;;  %s35_s27 = sadd.s32 1, %s1186_s23 }
  0x13   : > { %1554 = sst [smem:[#allocation19_spill]] %s1174_s20  ;;  %p1284_p0 = scmp.ge.s32.totalorder %s35_s27, 2 }
  0x14   : > { %1555 = sst [smem:[#allocation20_spill]] %s1178_s21  ;;  %p53_p1 = scmp.eq.s32.totalorder %s1194_s25, 0 }
  0x15   : > { %1556 = sst [smem:[#allocation21_spill]] %s1182_s22  ;;  %p59_p2 = scmp.eq.s32.totalorder %s1281_s26, 0 }
  0x16   : > { %1557 = sst [smem:[#allocation22_spill]] %s1190_s24  ;;  %s71_s29 = sadd.s32 1, %s1162_s17 }
  0x17   : > { %1558 = sst [smem:[#allocation23_spill]] %s1194_s25  ;;  %s1603_s27 = smov (%p1284_p0, %s35_s27), 0 }
  0x18   : > { %1560 = sst [smem:[#allocation24_spill]] %s1603_s27  ;;  %p78_p3 = scmp.ne.s32.totalorder %s1162_s17, %s1158_s16 }
  0x19   : > { %p84_p4 = scmp.ne.s32.totalorder %s1158_s16, %s1154_s15  ;;  %s68_s30 = ssub.s32 %s1186_s23, %s1603_s27 }
  0x1a   : > { %p69_p5 = scmp.eq.s32.totalorder %s68_s30, 0  ;;  %p80_p6 = por %p78_p3, %p53_p1 }
  0x1b   : > { %p1304_p7 = por %p84_p4, %p59_p2  ;;  %p1534_p8 = scmp.lt.s32.totalorder %s1194_s25, 4 }
  0x1c   : > { %s1310_s6 = scalar_select %p69_p5, %s1162_s17, %s71_s29  }
  0x1d   : > { %s1561_s5 = scalar_select %p1304_p7, 1, 0 }
  0x1e   : > { %1563 = sst [smem:[#allocation26_spill]] %s1310_s6  ;;  %s203_s7 = sand.u32 1, %s1194_s25  }
  0x1f   : > { %1562 = sst [smem:[#allocation25_spill]] %s1561_s5  ;;  %s1314_s8 = sand.u32 1, %s1162_s17  }
  0x20   : > { %s1564_s1 = sld [smem:[#allocation32_spill]]  ;;  %s206_s12 = scalar_lea.vmem [#allocation6], %s1314_s8 }
  0x21   : > { %s213_s13 = sshll.u32 %s206_s12, 4  ;;  %p1323_p9 = pnand %p1534_p8, %p80_p6  ;;  %s214_s13 = int_to_ptr.vmem [resolvable:$true] %s213_s13 }
  0x22   : > { %s736_s29 = sshll.u32 %s1314_s8, 4  ;;  %s1328_s30 = scalar_lea.sflag [#allocation7], %s203_s7 }
  0x23   : > { %s245_s10 = scalar_lea.vmem [#allocation9], %s736_s29  ;;  %p738_p10 = scmp.ge.s32.totalorder %s1194_s25, 1 }
  0x24   : > { %p260_p11 = scmp.lt.s32.totalorder %s1194_s25, 5  ;;  %s731_s7 = sadd.s32 4294967294, %s1194_s25  }
  0x25   : > { %p52_p13 = scmp.ne.s32.totalorder %s1174_s20, %s1170_s19  ;;  %p58_p4 = scmp.ne.s32.totalorder %s1170_s19, %s1166_s18 }
  0x26   : > { %s209_s11 = scalar_lea.hbm %s1564_s1, %s1186_s23  ;;  %p1338_p12 = pnand %p738_p10, %p260_p11 }
  0x27   : > { %s211_s14 = sshll.u32 %s209_s11, 4  ;;  %s252_s11 = sshll.u32 %s245_s10, 4  ;;  %s212_s14 = int_to_ptr.hbm [resolvable:$true] %s211_s14  ;;  %s1334_s11 = int_to_ptr.vmem [resolvable:$true] %s252_s11 }
  0x28   : > { %782 = dma.hbm_to_vmem [thread:$0]  (!%p1323_p9), %s212_s14, 16, %s214_s13, %s1328_s30  }
  0x29   : > { %s38_s1 = sadd.s32 1, %s1190_s24  ;;  %s45_s13 = sadd.s32 1, %s1174_s20 }
  0x2a   : > { %s1605_s1 = smov (!%p1284_p0, %s38_s1), %s1190_s24  ;;  %p1354_p5 = por %p53_p1, %p52_p13 }
  0x2b   : > { %p40_p3 = scmp.ge.s32.totalorder %s1605_s1, 2  ;;  %p160_p6 = scmp.eq.s32.totalorder %s1281_s26, 3 }
  0x2c   : > { %p1363_p10 = por %p59_p2, %p58_p4  ;;  %p166_p1 = scmp.eq.s32.totalorder %s731_s7, 3 }
  0x2d   : > { %s1607_s1 = smov (%p40_p3, %s1605_s1), 0  ;;  %p1367_p0 = por %p160_p6, %p52_p13 }
  0x2e   : > { %1568 = sst [smem:[#allocation27_spill]] %s1607_s1  ;;  %s42_s10 = ssub.s32 %s1190_s24, %s1607_s1 }
  0x2f   : > { %s1570_s29 = scalar_select %p1367_p0, 1, 0 }
  0x30   : > { %p43_p11 = scmp.eq.s32.totalorder %s42_s10, 0  ;;  %s186_s9 = sand.u32 1, %s1174_s20  }
  0x31   : > { %1571 = sst [smem:[#allocation28_spill]] %s1570_s29  ;;  %p1374_p8 = por %p166_p1, %p58_p4 }
  0x32   : > { %s1379_s6 = scalar_select %p43_p11, %s1174_s20, %s45_s13  }
  0x33   : > { %s1572_s27 = scalar_select %p1374_p8, 1, 0 }
  0x34   : > { %1574 = sst [smem:[#allocation30_spill]] %s1379_s6  ;;  %s189_s21 = scalar_lea.vmem [#allocation3], %s186_s9 }
  0x35   : > { %1573 = sst [smem:[#allocation29_spill]] %s1572_s27  ;;  %s196_s5 = sshll.u32 %s189_s21, 4  ;;  %s197_s5 = int_to_ptr.vmem [resolvable:$true] %s196_s5 }
  0x36   : > { %s1575_s0 = sld [smem:[#allocation31_spill]]  ;;  %p1576_p2 = scmp.lt.s32.totalorder %s1194_s25, 4 }
  0x37   : > { %s734_s13 = sshll.u32 %s186_s9, 4  ;;  %s735_s10 = sshll.u32 %s1190_s24, 3 }
  0x38   : > { %p1389_p13 = pnand %p1576_p2, %p1354_p5  ;;  %s224_s17 = scalar_lea.vmem [#allocation8], %s734_s13 }
  0x39   : > { %s187_s18 = scalar_lea.sflag [#allocation4], %s186_s9  ;;  %s1578_s6 = sshll.u32 %s1186_s23, 3 }
  0x3a   : > { %s1196_s25 = smov 256   ;;  %s1197_s13 = smov 128  }
  0x3b   : > { %s1198_s29 = smov 8  }
  0x3c   : > { %s192_s4 = scalar_lea.hbm %s1575_s0, %s1190_s24  ;;  %s228_s0 = scalar_lea.hbm %s1531_s2, %s735_s10 }
  0x3d   : > { %s194_s22 = sshll.u32 %s192_s4, 4  ;;  %s231_s4 = sshll.u32 %s224_s17, 4  ;;  %s195_s22 = int_to_ptr.hbm [resolvable:$true] %s194_s22  ;;  %s232_s4 = int_to_ptr.vmem [resolvable:$true] %s231_s4 }
  0x3e   : > { %779 = dma.hbm_to_vmem [thread:$0]  (!%p1389_p13), %s195_s22, 16, %s197_s5, %s187_s18  }
  0x3f   : > { %s229_s1 = sshll.u32 %s228_s0, 4  ;;  %s249_s24 = scalar_lea.hbm %s1532_s3, %s1578_s6  ;;  %s230_s1 = int_to_ptr.hbm [resolvable:$true] %s229_s1 }
  0x40   : > { %785 = dma.hbm_to_vmem [thread:$0]  (!%p1389_p13), %s230_s1, 256, %s232_s4, %s1328_s30, %s1196_s25, %s1197_s13, %s1198_s29  }
  0x41   : > { %s250_s9 = sshll.u32 %s249_s24, 4  ;;  %s242_s22 = scalar_lea.sflag [#allocation10], %s1314_s8  ;;  %s251_s9 = int_to_ptr.hbm [resolvable:$true] %s250_s9 }
  0x42   : > { %788 = dma.hbm_to_vmem [thread:$0]  (!%p1323_p9), %s251_s9, 256, %s1334_s11, %s242_s22, %s1196_s25, %s1197_s13, %s1198_s29  }
  0x43   : > { %264 = sbr.rel (%p1338_p12) target bundleno = 610 (0x262), region = 36  ;;  %s1414_s0 = sand.u32 (!%p1338_p12), 1, %s1170_s19  }
  0x44   : > { %s267_s20 = scalar_lea.sflag (!%p1338_p12), [#allocation4], %s1414_s0  ;;  %s269_s27 = scalar_lea.vmem (!%p1338_p12), [#allocation3], %s1414_s0 }
  0x48   : > { %1133 = dma.done.wait (%p1363_p10), %s267_s20, 16  }
  0x49   : > { %1135 = vsyncadd (%p1363_p10), %s267_s20, 4294967280  ;;  %s275_s24 = sand.u32 1, %s1281_s26   ;;  %s1424_s25 = sand.u32 1, %s1158_s16  }
  0x4a   : > { %s276_s5 = scalar_lea.sflag [#allocation7], %s275_s24  ;;  %s278_s6 = scalar_lea.vmem [#allocation6], %s1424_s25 }
  0x4b   : > { %1137 = dma.done.wait (%p1304_p7), %s276_s5, 16  }
  0x4c   : > { %1139 = vsyncadd (%p1304_p7), %s276_s5, 4294967280  ;;  %s739_s8 = sshll.u32 %s1414_s0, 4 }
  0x4d   : > { %s1432_s15 = scalar_lea.vmem [#allocation8], %s739_s8 }
  0x4e   : > { %1141 = dma.done.wait (%p1363_p10), %s276_s5, 256  }
  0x4f   : > { %1143 = vsyncadd (%p1363_p10), %s276_s5, 4294967040  ;;  %s740_s26 = sshll.u32 %s1424_s25, 4  ;;  %s295_s30 = scalar_lea.sflag [#allocation10], %s1424_s25 }
  0x50   : > { %s1440_s11 = scalar_lea.vmem [#allocation9], %s740_s26 }
  0x51   : > { %1145 = dma.done.wait (%p1304_p7), %s295_s30, 256  }
  0x52   : > { %1147 = vsyncadd (%p1304_p7), %s295_s30, 4294967040  ;;  %s1446_s12 = scalar_lea.vmem [#allocation11], %s739_s8  ;;  %s1580_s29 = sld [smem:[#allocation20_spill]] }
  0x58   : > { %p742_p9 = scmp.ne.s32.totalorder %s1580_s29, 0 }
  0x5a   : > { %340 = sbr.rel (%p742_p9) target bundleno = 98 (0x62), region = 56 }
  0x5f   : > { %v1199_v0 = vmov 0.0  }
  0x60   : > { %341 = vst [vmem:[#allocation2] sm:$0xff] %v1199_v0 }
  0x61   : > { %342 = vst [vmem:[#allocation2 + $0x8] sm:$0xff] %v1199_v0 }
  0x62 PF: > { %v346_v1 = vlaneseq  ;;  %v906_v6 = vld [vmem:[%s278_s6] ss:$0 sm:$0xff]  ;;  %s1581_s28 = sld [smem:[#allocation20_spill]] }
  0x63   : > { %v1451_v19 = vld [vmem:[%s269_s27] ss:$0 sm:$0xff] }
  0x64   : > { %v347_v2 = vshrl.u32 %v346_v1, 7 }
  0x66   : > { %v438_v3 = vadd.s32 120, %v347_v2  ;;  %v426_v4 = vadd.s32 104, %v347_v2  ;;  %v414_v5 = vadd.s32 88, %v347_v2  ;;  %v420_v7 = vadd.s32 96, %v347_v2 }
  0x67   : > { %v432_v8 = vadd.s32 112, %v347_v2  ;;  %v408_v9 = vadd.s32 80, %v347_v2  ;;  %v402_v10 = vadd.s32 72, %v347_v2  ;;  %v390_v11 = vadd.s32 56, %v347_v2 }
  0x68   : > { %889 = vset.pattern.permute.xlu0 %v438_v3  ;;  %891 = vset.pattern.permute.xlu1 %v426_v4  ;;  %v396_v12 = vadd.s32 64, %v347_v2  ;;  %v384_v13 = vadd.s32 48, %v347_v2  ;;  %v360_v14 = vadd.s32 16, %v347_v2  ;;  %v378_v15 = vadd.s32 40, %v347_v2  ;;  %p743_p7 = scmp.ne.s32.totalorder %s1581_s28, 1 }
  0x69   : > { %893 = vset.pattern.permute.xlu2 %v414_v5  ;;  %v372_v16 = vadd.s32 32, %v347_v2  ;;  %v366_v17 = vadd.s32 24, %v347_v2  ;;  %v354_v18 = vadd.s32 8, %v347_v2 }
  0x70   : > { %428 = vperm.xlu1 %891, %v906_v6   ;;  %440 = vperm.xlu0 %889, %v906_v6  }
  0x71   : > { %416 = vperm.xlu2 %893, %v906_v6  }
  0x78   : > { %892 = vset.pattern.permute.xlu1 %v420_v7  ;;  %890 = vset.pattern.permute.xlu0 %v432_v8 }
  0x79   : > { %894 = vset.pattern.permute.xlu2 %v408_v9 }
  0x80   : > { %422 = vperm.xlu1 %892, %v906_v6   ;;  %434 = vperm.xlu0 %890, %v906_v6  }
  0x81   : > { %410 = vperm.xlu2 %894, %v906_v6  }
  0x88   : > { %895 = vset.pattern.permute.xlu1 %v402_v10  ;;  %897 = vset.pattern.permute.xlu0 %v390_v11 }
  0x89   : > { %896 = vset.pattern.permute.xlu2 %v396_v12 }
  0x90   : > { %404 = vperm.xlu1 %895, %v906_v6   ;;  %392 = vperm.xlu0 %897, %v906_v6  }
  0x91   : > { %398 = vperm.xlu2 %896, %v906_v6  }
  0x98   : > { %898 = vset.pattern.permute.xlu1 %v384_v13  ;;  %902 = vset.pattern.permute.xlu0 %v360_v14 }
  0x99   : > { %899 = vset.pattern.permute.xlu2 %v378_v15 }
  0xa0   : > { %386 = vperm.xlu1 %898, %v906_v6   ;;  %362 = vperm.xlu0 %902, %v906_v6  }
  0xa1   : > { %380 = vperm.xlu2 %899, %v906_v6  }
  0xa8   : > { %900 = vset.pattern.permute.xlu1 %v372_v16  ;;  %905 = vset.pattern.permute.xlu0 %v438_v3 }
  0xa9   : > { %901 = vset.pattern.permute.xlu2 %v366_v17 }
  0xb0   : > { %374 = vperm.xlu1 %900, %v906_v6  }
  0xb1   : > { %368 = vperm.xlu2 %901, %v906_v6  }
  0xb8   : > { %903 = vset.pattern.permute.xlu1 %v354_v18 }
  0xb9   : > { %904 = vset.pattern.permute.xlu2 %v347_v2 }
  0xc0   : > { %356 = vperm.xlu1 %903, %v906_v6  }
  0xc1   : > { %350 = vperm.xlu2 %904, %v906_v6  }
  0xcb   : > { %v417_v23 = vpop.permute.xlu2 %416 }
  0xcc   : > { %v456_v31 = vsub.f32 %v417_v23, %v1451_v19 }
  0xce   : > { %v472_v40 = vmul.f32 %v456_v31, %v456_v31 }
  0xd0   : > { %v488_v47 = vsub.f32 0.0, %v472_v40 }
  0xd2   : > { %v515_v51 = vmul.f32 1.442695, %v488_v47 }
  0xdb   : > { %v411_v28 = vpop.permute.xlu2 %410 }
  0xdc   : > { %v455_v36 = vsub.f32 %v411_v28, %v1451_v19 }
  0xde   : > { %v471_v44 = vmul.f32 %v455_v36, %v455_v36 }
  0xe0   : > { %v487_v50 = vsub.f32 0.0, %v471_v44 }
  0xe2   : > { %v441_v20 = vpop.permute.xlu0 %440  ;;  %v429_v26 = vpop.permute.xlu1 %428  ;;  %v513_v53 = vmul.f32 1.442695, %v487_v50 }
  0xe3   : > { %v460_v21 = vsub.f32 %v441_v20, %v1451_v19  ;;  %v458_v27 = vsub.f32 %v429_v26, %v1451_v19 }
  0xe5   : > { %v476_v22 = vmul.f32 %v460_v21, %v460_v21  ;;  %v474_v30 = vmul.f32 %v458_v27, %v458_v27 }
  0xe7   : > { %v492_v24 = vsub.f32 0.0, %v476_v22  ;;  %v490_v39 = vsub.f32 0.0, %v474_v30 }
  0xe9   : > { %v523_v25 = vmul.f32 1.442695, %v492_v24  ;;  %v519_v46 = vmul.f32 1.442695, %v490_v39 }
  0xeb   : > { %908 = vpow2.f32 %v523_v25  ;;  %v399_v42 = vpop.permute.xlu2 %398 }
  0xec   : > { %v453_v48 = vsub.f32 %v399_v42, %v1451_v19 }
  0xee   : > { %v469_v52 = vmul.f32 %v453_v48, %v453_v48 }
  0xf0   : > { %v485_v56 = vsub.f32 0.0, %v469_v52 }
  0xf1   : > { %v909_v29 = vpop.eup %908 }
  0xf2   : > { %v423_v32 = vpop.permute.xlu1 %422  ;;  %v435_v33 = vpop.permute.xlu0 %434  ;;  %529 = vmatpush.msra.mxu0 %v909_v29  ;;  %750 = vmatpush.msra.mxu1 %v909_v29  ;;  %v509_v0 = vmul.f32 1.442695, %v485_v56 }
  0xf3   : > { %v457_v34 = vsub.f32 %v423_v32, %v1451_v19  ;;  %v459_v35 = vsub.f32 %v435_v33, %v1451_v19 }
  0xf5   : > { %v473_v37 = vmul.f32 %v457_v34, %v457_v34  ;;  %v475_v38 = vmul.f32 %v459_v35, %v459_v35 }
  0xf7   : > { %v491_v41 = vsub.f32 0.0, %v475_v38  ;;  %v489_v43 = vsub.f32 0.0, %v473_v37 }
  0xf9   : > { %v521_v45 = vmul.f32 1.442695, %v491_v41  ;;  %v517_v49 = vmul.f32 1.442695, %v489_v43 }
  0xfb   : > { %910 = vpow2.f32 %v521_v45  ;;  %v381_v3 = vpop.permute.xlu2 %380 }
  0xfc   : > { %912 = vpow2.f32 %v519_v46  ;;  %v450_v8 = vsub.f32 %v381_v3, %v1451_v19 }
  0xfd   : > { %914 = vpow2.f32 %v517_v49 }
  0xfe   : > { %916 = vpow2.f32 %v515_v51  ;;  %v466_v9 = vmul.f32 %v450_v8, %v450_v8 }
  0xff   : > { %918 = vpow2.f32 %v513_v53  ;;  %v527_v53 = vld [vmem:[%s1440_s11] sm:$0xff] }
 0x100   : > { %920 = vpow2.f32 %v509_v0  ;;  %v482_v13 = vsub.f32 0.0, %v466_v9 }
 0x101   : > { %v911_v54 = vpop.eup %910 }
 0x102   : > { %v405_v55 = vpop.permute.xlu1 %404  ;;  %v393_v57 = vpop.permute.xlu0 %392  ;;  %530 = vmatpush.msra.mxu0 %v911_v54  ;;  %751 = vmatpush.msra.mxu1 %v911_v54  ;;  %v503_v17 = vmul.f32 1.442695, %v482_v13  ;;  %v528_v54 = vld [vmem:[%s1440_s11 + $0x8] sm:$0xff] }
 0x103   : > { %v454_v58 = vsub.f32 %v405_v55, %v1451_v19  ;;  %v452_v59 = vsub.f32 %v393_v57, %v1451_v19  ;;  %v913_v60 = vpop.eup %912  ;;  %v526_v55 = vld [vmem:[#allocation2 + $0x8] sm:$0xff] }
 0x104   : > { %531 = vmatpush.msra.mxu0 %v913_v60  ;;  %752 = vmatpush.msra.mxu1 %v913_v60  ;;  %v915_v63 = vpop.eup %914 }
 0x105   : > { %v470_v61 = vmul.f32 %v454_v58, %v454_v58  ;;  %v468_v62 = vmul.f32 %v452_v59, %v452_v59  ;;  %v917_v4 = vpop.eup %916 }
 0x106   : > { %532 = vmatpush.msra.mxu0 %v915_v63  ;;  %753 = vmatpush.msra.mxu1 %v915_v63  ;;  %v919_v7 = vpop.eup %918 }
 0x107   : > { %v486_v1 = vsub.f32 0.0, %v470_v61  ;;  %v484_v2 = vsub.f32 0.0, %v468_v62  ;;  %v921_v10 = vpop.eup %920 }
 0x108   : > { %533 = vmatpush.msra.mxu0 %v917_v4  ;;  %754 = vmatpush.msra.mxu1 %v917_v4 }
 0x109   : > { %v511_v5 = vmul.f32 1.442695, %v486_v1  ;;  %v507_v6 = vmul.f32 1.442695, %v484_v2 }
 0x10a   : > { %534 = vmatpush.msra.mxu0 %v919_v7  ;;  %755 = vmatpush.msra.mxu1 %v919_v7 }
 0x10b   : > { %922 = vpow2.f32 %v511_v5  ;;  %v369_v20 = vpop.permute.xlu2 %368 }
 0x10c   : > { %924 = vpow2.f32 %v507_v6  ;;  %v448_v22 = vsub.f32 %v369_v20, %v1451_v19 }
 0x10d   : > { %926 = vpow2.f32 %v503_v17 }
 0x10e   : > { %v464_v25 = vmul.f32 %v448_v22, %v448_v22 }
 0x110   : > { %v480_v30 = vsub.f32 0.0, %v464_v25 }
 0x111   : > { %v923_v11 = vpop.eup %922 }
 0x112   : > { %v387_v12 = vpop.permute.xlu1 %386  ;;  %535 = vmatpush.msra.mxu0 %v923_v11  ;;  %756 = vmatpush.msra.mxu1 %v923_v11  ;;  %v925_v14 = vpop.eup %924  ;;  %v499_v34 = vmul.f32 1.442695, %v480_v30 }
 0x113   : > { %v451_v15 = vsub.f32 %v387_v12, %v1451_v19  ;;  %v363_v23 = vpop.permute.xlu0 %362  ;;  %v927_v26 = vpop.eup %926 }
 0x114   : > { %536 = vmatpush.msra.mxu0 %v921_v10  ;;  %757 = vmatpush.msra.mxu1 %v921_v10  ;;  %v447_v24 = vsub.f32 %v363_v23, %v1451_v19 }
 0x115   : > { %v467_v16 = vmul.f32 %v451_v15, %v451_v15 }
 0x116   : > { %537 = vmatpush.msra.mxu0 %v925_v14  ;;  %758 = vmatpush.msra.mxu1 %v925_v14  ;;  %v463_v28 = vmul.f32 %v447_v24, %v447_v24 }
 0x117   : > { %v483_v18 = vsub.f32 0.0, %v467_v16 }
 0x118   : > { %v479_v33 = vsub.f32 0.0, %v463_v28 }
 0x119   : > { %v505_v21 = vmul.f32 1.442695, %v483_v18 }
 0x11a   : > { %v497_v38 = vmul.f32 1.442695, %v479_v33 }
 0x11b   : > { %928 = vpow2.f32 %v505_v21  ;;  %v351_v36 = vpop.permute.xlu2 %350 }
 0x11c   : > { %930 = vpow2.f32 %v499_v34  ;;  %v445_v39 = vsub.f32 %v351_v36, %v1451_v19 }
 0x11e   : > { %v461_v40 = vmul.f32 %v445_v39, %v445_v39 }
 0x120   : > { %v477_v44 = vsub.f32 0.0, %v461_v40 }
 0x121   : > { %v929_v27 = vpop.eup %928 }
 0x122   : > { %v375_v29 = vpop.permute.xlu1 %374  ;;  %538 = vmatpush.msra.mxu0 %v929_v27  ;;  %759 = vmatpush.msra.mxu1 %v929_v27  ;;  %v931_v41 = vpop.eup %930  ;;  %v493_v48 = vmul.f32 1.442695, %v477_v44 }
 0x123   : > { %v449_v31 = vsub.f32 %v375_v29, %v1451_v19 }
 0x124   : > { %539 = vmatpush.msra.mxu0 %v927_v26  ;;  %760 = vmatpush.msra.mxu1 %v927_v26 }
 0x125   : > { %v465_v32 = vmul.f32 %v449_v31, %v449_v31 }
 0x127   : > { %v481_v35 = vsub.f32 0.0, %v465_v32 }
 0x129   : > { %v501_v37 = vmul.f32 1.442695, %v481_v35 }
 0x12b   : > { %932 = vpow2.f32 %v501_v37 }
 0x12c   : > { %934 = vpow2.f32 %v497_v38 }
 0x12d   : > { %936 = vpow2.f32 %v493_v48 }
 0x131   : > { %v933_v42 = vpop.eup %932 }
 0x132   : > { %v357_v43 = vpop.permute.xlu1 %356  ;;  %540 = vmatpush.msra.mxu0 %v933_v42  ;;  %761 = vmatpush.msra.mxu1 %v933_v42  ;;  %v935_v45 = vpop.eup %934 }
 0x133   : > { %v446_v46 = vsub.f32 %v357_v43, %v1451_v19  ;;  %v937_v51 = vpop.eup %936  ;;  %v525_v19 = vld [vmem:[#allocation2] sm:$0xff] }
 0x134   : > { %541 = vmatpush.msra.mxu0 %v931_v41  ;;  %762 = vmatpush.msra.mxu1 %v931_v41 }
 0x135   : > { %v462_v47 = vmul.f32 %v446_v46, %v446_v46 }
 0x136   : > { %542 = vmatpush.msra.mxu0 %v935_v45  ;;  %763 = vmatpush.msra.mxu1 %v935_v45 }
 0x137   : > { %v478_v49 = vsub.f32 0.0, %v462_v47 }
 0x139   : > { %v495_v50 = vmul.f32 1.442695, %v478_v49 }
 0x13b   : > { %938 = vpow2.f32 %v495_v50 }
 0x141   : > { %v939_v52 = vpop.eup %938 }
 0x142   : > { %543 = vmatpush.msra.mxu0 %v939_v52  ;;  %764 = vmatpush.msra.mxu1 %v939_v52 }
 0x144   : > { %544 = vmatpush.msra.mxu0 %v937_v51  ;;  %765 = vmatpush.msra.mxu1 %v937_v51 }
 0x145   : > { %545 = vmatmul.f32.vlgmr.msra.gmra.mxu0 %v527_v53  ;;  %548 = vmatmul.f32.vlgmr.msra.gmra.mxu1 %v528_v54 }
 0x1c2   : > { %v546_v56 = vpop.f32.mrf.mxu0  ;;  %v549_v57 = vpop.f32.mrf.mxu1  ;;  %559 = sbr.rel (%p743_p7) target bundleno = 588 (0x24c), region = 60 }
 0x1c3   : > { %v552_v58 = vadd.f32 %v546_v56, %v525_v19  ;;  %v553_v59 = vadd.f32 %v549_v57, %v526_v55 }
 0x1c5   : > { %554 = vst [vmem:[#allocation2] sm:$0xff] %v552_v58 }
 0x1c6   : > { %555 = vst [vmem:[#allocation2 + $0x8] sm:$0xff] %v553_v59 }
 0x1c7   : > { %v560_v60 = vld [vmem:[%s1432_s15] sm:$0xff]  ;;  %v561_v63 = vld [vmem:[%s1432_s15 + $0x8] sm:$0xff] }
 0x1cc   : > { %v562_v61 = vld [vmem:[#allocation2] sm:$0xff] }
 0x1cd   : > { %v564_v62 = vmul.f32 %v562_v61, %v560_v60  ;;  %v563_v0 = vld [vmem:[#allocation2 + $0x8] sm:$0xff] }
 0x1ce   : > { %v565_v1 = vmul.f32 %v563_v0, %v561_v63 }
 0x1cf   : > { %566 = vadd.xlane.f32.xlu0 %v564_v62 }
 0x1d7   : > { %568 = vadd.xlane.f32.xlu0 %v565_v1 }
 0x242   : > { %v567_v2 = vpop.xlane.xlu0 %566 }
 0x243   : > { %570 = vst [vmem:[%s1446_s12] sm:$0xff] %v567_v2 }
 0x24a   : > { %v569_v3 = vpop.xlane.xlu0 %568 }
 0x24b   : > { %571 = vst [vmem:[%s1446_s12 + $0x8] sm:$0xff] %v569_v3 }
 0x24c PF: > { %s1582_s7 = sld [smem:[#allocation21_spill]]  ;;  %s585_s9 = sshll.u32 %s1446_s12, 4  ;;  %s586_s9 = int_to_ptr.vmem [resolvable:$true] %s585_s9 }
 0x24d   : > { %s1584_s21 = sld [smem:[#allocation33_spill]]  ;;  %s573_s20 = scalar_lea.sflag [#allocation5], %s1414_s0 }
 0x252   : > { %s749_s17 = sshll.u32 %s1582_s7, 4 }
 0x253   : > { %s1585_s14 = smov %s1584_s21  ;;  %s584_s13 = scalar_lea.hbm %s1584_s21, %s749_s17 }
 0x254   : > { %s587_s22 = sshll.u32 %s584_s13, 4  ;;  %s1080_s5 = scalar_lea.hbm %s1585_s14, 32  ;;  %s588_s22 = int_to_ptr.hbm [resolvable:$true] %s587_s22 }
 0x255   : > { %s1074_s27 = sshra.s32 %s588_s22, 4  ;;  %s1075_s27 = int_to_ptr.hbm [resolvable:$true] %s1074_s27 }
 0x256   : > { %s1076_s1 = scalar_lea.hbm %s1075_s27, 16  ;;  %p1081_p5 = scmp.lt.s32.totalorder %s1075_s27, %s1585_s14 }
 0x257   : > { %p1077_p12 = scmp.ne.s32.totalorder %s1075_s27, %s1076_s1  ;;  %p1082_p6 = scmp.lt.s32.totalorder %s1080_s5, %s1076_s1 }
 0x259   : > { %p1078_p3 = pnand %p1077_p12, %p1367_p0  ;;  %p1083_p10 = por %p1082_p6, %p1081_p5 }
 0x25b   : > { %p1079_p4 = pneg %p1078_p3 }
 0x25d   : > { %p1084_p1 = pnand %p1083_p10, %p1079_p4 }
 0x25f   : > { %1087 = shalt.err (!%p1084_p1)
}
 0x260   : > { %s1200_s0 = smov 128   ;;  %s1201_s15 = smov 8  }
 0x261   : > { %774 = dma.vmem_to_hbm [thread:$0]  (%p1367_p0), %s586_s9, 256, %s588_s22, %s573_s20, %s1200_s0, %s1200_s0, %s1201_s15  }
 0x262 PF: > { %s1586_s26 = sld [smem:[#allocation23_spill]] }
 0x263   : > { %s1587_s30 = sld [smem:[#allocation18_spill]] }
 0x268   : > { %p794_p11 = scmp.ge.s32.totalorder %s1586_s26, 2 }
 0x269   : > { %s602_s12 = sand.u32 1, %s1587_s30  }
 0x26a   : > { %p790_p2 = pnand %p794_p11, %p1374_p8  ;;  %s603_s29 = scalar_lea.sflag [#allocation5], %s602_s12 }
 0x26c   : > { %p791_p13 = pneg %p790_p2 }
 0x26e   : > { %1149 = dma.done.wait (%p791_p13), %s603_s29, 256  }
 0x26f   : > { %1151 = vsyncadd (%p791_p13), %s603_s29, 4294967040  ;;  %s26_s25 = sadd.s32 1, %s1586_s26   ;;  %s1589_s28 = sld [smem:[#allocation17_spill]] }
 0x270   : > { %p23_p9 = scmp.ge.s32.totalorder %s26_s25, 6   ;;  %s1590_s17 = sld [smem:[#allocation26_spill]] }
 0x271   : > { %s1591_s7 = sld [smem:[#allocation19_spill]]  ;;  %s1596_s15 = smov %s1158_s16 }
 0x272   : > { %s1592_s20 = sld [smem:[#allocation30_spill]]  ;;  %s1598_s18 = smov %s1170_s19 }
 0x273   : > { %s1593_s22 = sld [smem:[#allocation22_spill]]  ;;  %s1600_s21 = smov %s1186_s23 }
 0x274   : > { %s1594_s10 = sld [smem:[#allocation24_spill]] }
 0x275   : > { %s1595_s24 = sld [smem:[#allocation27_spill]]  ;;  %s1597_s16 = smov %s1589_s28 }
 0x276   :  { %25 = sbr.rel (!%p23_p9) target bundleno = 17 (0x11), region = 126 }
 0x277   : > { %s1599_s19 = smov %s1591_s7 }
 0x27a   : > { %s1601_s23 = smov %s1594_s10 }
 0x27b   :  { %609 = vsyncpa [#allocation4], 1 }
 0x27c   :  { %611 = vsyncpa [#allocation4 + $0x1], 1 }
 0x27d   :  { %612 = vsyncpa [#allocation7], 1 }
 0x27e   :  { %614 = vsyncpa [#allocation7 + $0x1], 1 }
 0x27f   :  { %615 = vsyncpa [#allocation10], 1 }
 0x280   :  { %617 = vsyncpa [#allocation10 + $0x1], 1 }
 0x281   :  { %618 = vsyncpa [#allocation5], 1 }
 0x282   :  { %620 = vsyncpa [#allocation5 + $0x1], 1 }

</bundles_post_ra>
